<compile_context>
chip_gen: v5e
topology: v5e:2x2
jax: 0.10.0
libtpu: 0.0.40
codegen_flags: <defaults>
</compile_context>

<pallas_src>
import functools

import jax
import jax.numpy as jnp
from jax.experimental import pallas as pl
from jax.experimental.pallas import tpu as pltpu

_LANES = 128     # TPU vreg lane width
_SUBLANES = 8    # TPU vreg sublane width


def _round_up(x, m):
    return ((x + m - 1) // m) * m


def _make_mlp_kernel(n_hidden):
    """Fused MLP kernel: n_hidden x (Linear + ReLU) followed by one output Linear.

    Ref layout: (x_tile, w0, b0, w1, b1, ..., w_out, b_out, o_tile).
    Weights are bf16 (in_features, out_features); biases are f32 (1, out_features).
    """

    def kernel(*refs):
        x_ref = refs[0]
        o_ref = refs[-1]
        p = refs[1:-1]

        h = x_ref[...]                                     # (TM, state_size) f32
        for i in range(n_hidden):
            w = p[2 * i][...]                              # bf16 (in, out)
            b = p[2 * i + 1][...]                          # f32  (1, out)
            # bf16 MXU matmul with f32 accumulation; bias + ReLU stay f32.
            h = jnp.dot(h.astype(w.dtype), w,
                        preferred_element_type=jnp.float32) + b
            h = jnp.maximum(h, 0.0)                        # ReLU
            # dropout: identity (eval mode)
        w_out = p[-2][...]
        b_out = p[-1][...]
        o_ref[...] = (jnp.dot(h.astype(w_out.dtype), w_out,
                              preferred_element_type=jnp.float32)
                      + b_out).astype(o_ref.dtype)         # lane-dense (TM, 128k) store

    return kernel


def init_qnetwork_params(key, state_size, action_size, hidden_layers):
    """Init mimicking PyTorch nn.Linear default (uniform +/- 1/sqrt(fan_in)).

    Returns a flat list [w0, b0, w1, b1, ..., w_out, b_out]:
      * weights pre-transposed to (in_features, out_features), stored as bf16
        (bf16 MXU path on every TPU generation, f32 accumulation in-kernel),
      * biases stored as f32 (1, out_features) for clean sublane broadcasting.
    """
    sizes = [state_size] + list(hidden_layers) + [action_size]
    params = []
    for fan_in, fan_out in zip(sizes[:-1], sizes[1:]):
        key, kw, kb = jax.random.split(key, 3)
        bound = 1.0 / (fan_in ** 0.5)
        w = jax.random.uniform(kw, (fan_in, fan_out), jnp.float32, -bound, bound)
        b = jax.random.uniform(kb, (1, fan_out), jnp.float32, -bound, bound)
        params.append(w.astype(jnp.bfloat16))
        params.append(b)
    return params


@functools.partial(jax.jit, static_argnames=("n_hidden", "tile_m"))
def qnetwork_forward(state, params, n_hidden, tile_m=512):
    batch, state_size = state.shape
    action_size = params[-1].shape[-1]

    # --- batch tiling: TM rows per grid step, batch zero-padded to a tile multiple ---
    tm = min(int(tile_m), _round_up(batch, _SUBLANES))
    tm = _round_up(tm, _SUBLANES)
    padded_batch = _round_up(batch, tm)
    if padded_batch != batch:
        state = jnp.pad(state, ((0, padded_batch - batch), (0, 0)))

    # --- lane-dense output: pad the output projection to a multiple of 128 lanes ---
    padded_actions = _round_up(action_size, _LANES)
    w_out, b_out = params[-2], params[-1]
    if padded_actions != action_size:
        w_out = jnp.pad(w_out, ((0, 0), (0, padded_actions - action_size)))
        b_out = jnp.pad(b_out, ((0, 0), (0, padded_actions - action_size)))
    kparams = list(params[:-2]) + [w_out, b_out]

    grid = (padded_batch // tm,)

    # Activation stream is tiled over the grid; weights/biases use constant index
    # maps so they are fetched once and stay VMEM-resident for all grid steps.
    in_specs = [pl.BlockSpec((tm, state_size), lambda i: (i, 0))]
    for p in kparams:
        in_specs.append(pl.BlockSpec(p.shape, lambda i: (0, 0)))
    out_specs = pl.BlockSpec((tm, padded_actions), lambda i: (i, 0))

    # Advisory cost estimate for the XLA scheduler.
    flops = 0
    for w in kparams[0::2]:
        flops += 2 * padded_batch * w.shape[0] * w.shape[1]
    bytes_accessed = state.size * state.dtype.itemsize
    for p in kparams:
        bytes_accessed += p.size * p.dtype.itemsize
    bytes_accessed += padded_batch * padded_actions * 4

    out = pl.pallas_call(
        _make_mlp_kernel(n_hidden),
        out_shape=jax.ShapeDtypeStruct((padded_batch, padded_actions), jnp.float32),
        grid=grid,
        in_specs=in_specs,
        out_specs=out_specs,
        compiler_params=pltpu.CompilerParams(
            # batch axis is embarrassingly parallel -> megacore sharding on v7x.
            dimension_semantics=("parallel",),
            # Working set (double-buffered state/output tiles + resident params) is
            # well under the default scoped VMEM on all generations at TM<=2048, so
            # no vmem_limit_bytes override is needed.
        ),
        cost_estimate=pl.CostEstimate(
            flops=flops, transcendentals=0, bytes_accessed=bytes_accessed),
    )(state, *kparams)

    return out[:batch, :action_size]


def qnetwork_reference(state, params, n_hidden):
    """Pure-JAX reference using the same bf16-weight / f32-accumulate path."""
    h = state
    for i in range(n_hidden):
        w, b = params[2 * i], params[2 * i + 1]
        h = jnp.maximum(
            jnp.dot(h.astype(w.dtype), w, preferred_element_type=jnp.float32) + b, 0.0)
    w, b = params[-2], params[-1]
    return jnp.dot(h.astype(w.dtype), w, preferred_element_type=jnp.float32) + b


if __name__ == "__main__":
    # Small shapes consistent with the module's forward.
    batch = 8
    state_size = 16
    hidden_layers = [32, 32]
    action_size = 4

    key = jax.random.PRNGKey(0)
    k_state, k_params = jax.random.split(key)

    state = jax.random.normal(k_state, (batch, state_size), dtype=jnp.float32)
    params = init_qnetwork_params(k_params, state_size, action_size, hidden_layers)

    out = qnetwork_forward(state, params, n_hidden=len(hidden_layers))
    out = jax.block_until_ready(out)

    ref = qnetwork_reference(state, params, n_hidden=len(hidden_layers))
    assert out.shape == (batch, action_size)
    assert jnp.allclose(out, ref, atol=1e-3, rtol=1e-3), \
        "Pallas output mismatch vs JAX reference"

    print("KERNEL_OK")
</pallas_src>

<mosaic_0001>
module attributes {stable_mosaic.version = 11 : i64} {
  func.func @kernel(%arg0: i32, %arg1: memref<8x16xf32, #tpu.memory_space<vmem>>, %arg2: memref<16x32xbf16, #tpu.memory_space<vmem>>, %arg3: memref<1x32xf32, #tpu.memory_space<vmem>>, %arg4: memref<32x32xbf16, #tpu.memory_space<vmem>>, %arg5: memref<1x32xf32, #tpu.memory_space<vmem>>, %arg6: memref<32x128xbf16, #tpu.memory_space<vmem>>, %arg7: memref<1x128xf32, #tpu.memory_space<vmem>>, %arg8: memref<8x128xf32, #tpu.memory_space<vmem>>) attributes {dimension_semantics = [#tpu.dimension_semantics<parallel>], iteration_bounds = array<i64: 1>, scalar_prefetch = 0 : i64, scratch_operands = 0 : i64, tpu.core_type = #tpu.core_type<tc>, window_params = [{transform_indices = @transform_0, window_bounds = array<i64: 8, 16>}, {pipeline_mode = #tpu.pipeline_mode<synchronous>, transform_indices = @transform_1, window_bounds = array<i64: 16, 32>}, {pipeline_mode = #tpu.pipeline_mode<synchronous>, transform_indices = @transform_2, window_bounds = array<i64: 1, 32>}, {pipeline_mode = #tpu.pipeline_mode<synchronous>, transform_indices = @transform_3, window_bounds = array<i64: 32, 32>}, {pipeline_mode = #tpu.pipeline_mode<synchronous>, transform_indices = @transform_4, window_bounds = array<i64: 1, 32>}, {pipeline_mode = #tpu.pipeline_mode<synchronous>, transform_indices = @transform_5, window_bounds = array<i64: 32, 128>}, {pipeline_mode = #tpu.pipeline_mode<synchronous>, transform_indices = @transform_6, window_bounds = array<i64: 1, 128>}, {transform_indices = @transform_7, window_bounds = array<i64: 8, 128>}]} {
    %c0 = arith.constant 0 : index
    %c0_0 = arith.constant 0 : index
    %0 = vector.load %arg1[%c0, %c0_0] : memref<8x16xf32, #tpu.memory_space<vmem>>, vector<8x16xf32>
    %c0_1 = arith.constant 0 : index
    %c0_2 = arith.constant 0 : index
    %1 = vector.load %arg2[%c0_1, %c0_2] : memref<16x32xbf16, #tpu.memory_space<vmem>>, vector<16x32xbf16>
    %c0_3 = arith.constant 0 : index
    %c0_4 = arith.constant 0 : index
    %2 = vector.load %arg3[%c0_3, %c0_4] : memref<1x32xf32, #tpu.memory_space<vmem>>, vector<1x32xf32>
    %3 = arith.truncf %0 : vector<8x16xf32> to vector<8x16xbf16>
    %cst = arith.constant dense<0.000000e+00> : vector<8x32xf32>
    %4 = tpu.matmul %3, %1, %cst {dimension_numbers = #tpu.dot_dimension_numbers<[1], [0], [0], [1], [0, 0, 1, 1], [], []>} : vector<8x16xbf16>, vector<16x32xbf16>, vector<8x32xf32> -> vector<8x32xf32>
    %5 = vector.broadcast %2 : vector<1x32xf32> to vector<8x32xf32>
    %6 = arith.addf %4, %5 : vector<8x32xf32>
    %cst_5 = arith.constant 0.000000e+00 : f32
    %7 = vector.broadcast %cst_5 : f32 to vector<8x32xf32>
    %8 = arith.maximumf %6, %7 : vector<8x32xf32>
    %c0_6 = arith.constant 0 : index
    %c0_7 = arith.constant 0 : index
    %9 = vector.load %arg4[%c0_6, %c0_7] : memref<32x32xbf16, #tpu.memory_space<vmem>>, vector<32x32xbf16>
    %c0_8 = arith.constant 0 : index
    %c0_9 = arith.constant 0 : index
    %10 = vector.load %arg5[%c0_8, %c0_9] : memref<1x32xf32, #tpu.memory_space<vmem>>, vector<1x32xf32>
    %11 = arith.truncf %8 : vector<8x32xf32> to vector<8x32xbf16>
    %cst_10 = arith.constant dense<0.000000e+00> : vector<8x32xf32>
    %12 = tpu.matmul %11, %9, %cst_10 {dimension_numbers = #tpu.dot_dimension_numbers<[1], [0], [0], [1], [0, 0, 1, 1], [], []>} : vector<8x32xbf16>, vector<32x32xbf16>, vector<8x32xf32> -> vector<8x32xf32>
    %13 = vector.broadcast %10 : vector<1x32xf32> to vector<8x32xf32>
    %14 = arith.addf %12, %13 : vector<8x32xf32>
    %cst_11 = arith.constant 0.000000e+00 : f32
    %15 = vector.broadcast %cst_11 : f32 to vector<8x32xf32>
    %16 = arith.maximumf %14, %15 : vector<8x32xf32>
    %c0_12 = arith.constant 0 : index
    %c0_13 = arith.constant 0 : index
    %17 = vector.load %arg6[%c0_12, %c0_13] : memref<32x128xbf16, #tpu.memory_space<vmem>>, vector<32x128xbf16>
    %c0_14 = arith.constant 0 : index
    %c0_15 = arith.constant 0 : index
    %18 = vector.load %arg7[%c0_14, %c0_15] : memref<1x128xf32, #tpu.memory_space<vmem>>, vector<1x128xf32>
    %19 = arith.truncf %16 : vector<8x32xf32> to vector<8x32xbf16>
    %cst_16 = arith.constant dense<0.000000e+00> : vector<8x128xf32>
    %20 = tpu.matmul %19, %17, %cst_16 {dimension_numbers = #tpu.dot_dimension_numbers<[1], [0], [0], [1], [0, 0, 1, 1], [], []>} : vector<8x32xbf16>, vector<32x128xbf16>, vector<8x128xf32> -> vector<8x128xf32>
    %21 = vector.broadcast %18 : vector<1x128xf32> to vector<8x128xf32>
    %22 = arith.addf %20, %21 : vector<8x128xf32>
    %c0_17 = arith.constant 0 : index
    %c0_18 = arith.constant 0 : index
    %23 = vector.load %arg8[%c0_17, %c0_18] : memref<8x128xf32, #tpu.memory_space<vmem>>, vector<8x128xf32>
    tpu.vector_store %arg8[%c0_17, %c0_18], %22 {strides = array<i32>} : memref<8x128xf32, #tpu.memory_space<vmem>>, vector<8x128xf32>,
    return
  }
  func.func @transform_0(%arg0: i32) -> (i32, i32) {
    %c0_i32 = arith.constant 0 : i32
    %c0_i32_0 = arith.constant 0 : i32
    return %arg0, %c0_i32 : i32, i32
  }
  func.func @transform_1(%arg0: i32) -> (i32, i32) {
    %c0_i32 = arith.constant 0 : i32
    %c0_i32_0 = arith.constant 0 : i32
    %c0_i32_1 = arith.constant 0 : i32
    return %c0_i32, %c0_i32_0 : i32, i32
  }
  func.func @transform_2(%arg0: i32) -> (i32, i32) {
    %c0_i32 = arith.constant 0 : i32
    %c0_i32_0 = arith.constant 0 : i32
    %c0_i32_1 = arith.constant 0 : i32
    return %c0_i32, %c0_i32_0 : i32, i32
  }
  func.func @transform_3(%arg0: i32) -> (i32, i32) {
    %c0_i32 = arith.constant 0 : i32
    %c0_i32_0 = arith.constant 0 : i32
    %c0_i32_1 = arith.constant 0 : i32
    return %c0_i32, %c0_i32_0 : i32, i32
  }
  func.func @transform_4(%arg0: i32) -> (i32, i32) {
    %c0_i32 = arith.constant 0 : i32
    %c0_i32_0 = arith.constant 0 : i32
    %c0_i32_1 = arith.constant 0 : i32
    return %c0_i32, %c0_i32_0 : i32, i32
  }
  func.func @transform_5(%arg0: i32) -> (i32, i32) {
    %c0_i32 = arith.constant 0 : i32
    %c0_i32_0 = arith.constant 0 : i32
    %c0_i32_1 = arith.constant 0 : i32
    return %c0_i32, %c0_i32_0 : i32, i32
  }
  func.func @transform_6(%arg0: i32) -> (i32, i32) {
    %c0_i32 = arith.constant 0 : i32
    %c0_i32_0 = arith.constant 0 : i32
    %c0_i32_1 = arith.constant 0 : i32
    return %c0_i32, %c0_i32_0 : i32, i32
  }
  func.func @transform_7(%arg0: i32) -> (i32, i32) {
    %c0_i32 = arith.constant 0 : i32
    %c0_i32_0 = arith.constant 0 : i32
    return %arg0, %c0_i32 : i32, i32
  }
}

</mosaic_0001>

<bundles_post_ra>
// kernel: qnetwork_forward.1
= control target key start
LH: loop header
LB: loop body
LE: loop exit
PB: predicated region body
PF: predicated region fallthrough
CT: control target
= control target key end

     0   :  { %vm41_vm0 = vcmask 130048   ;;  %vm80_vm1 = vcmask 261120   ;;  %s241_s1 = inlined_call_operand.vmem [shape: bf16[16,32], index: 1, kind: input, shape index: {}]   ;;  %s242_s0 = inlined_call_operand.vmem [shape: f32[8,16], index: 0, kind: input, shape index: {}]   ;;  %s243_s2 = inlined_call_operand.vmem [shape: f32[1,32], index: 2, kind: input, shape index: {}]   ;;  %s244_s4 = inlined_call_operand.vmem [shape: f32[1,32], index: 4, kind: input, shape index: {}]   ;;  %s245_s3 = inlined_call_operand.vmem [shape: bf16[32,32], index: 3, kind: input, shape index: {}]   ;;  %s246_s6 = inlined_call_operand.vmem [shape: f32[1,128], index: 6, kind: input, shape index: {}]   ;;  %s247_s5 = inlined_call_operand.vmem [shape: bf16[32,128], index: 5, kind: input, shape index: {}]   ;;  %s248_s7 = inlined_call_operand.vmem [shape: f32[8,128], index: 7, kind: output, shape index: {}]  }
   0x1   :  { %v163_v0 = vld [vmem:[%s241_s1] sm:$0xff]  ;;  %v165_v3 = vld [vmem:[%s245_s3 + $0x8] sm:$0xff] }
   0x2   :  { %v27_v1 = vld [vmem:[%s242_s0] sm:$0xff]  ;;  %52 = vmatpush.bf16.msra.mxu0 %v163_v0  ;;  %90 = vmatpush.bf16.msra.mxu1 %v165_v3  ;;  %v167_v11 = vld [vmem:[%s247_s5 + $0x8] sm:$0xff] }
   0x3   :  { %v31_v2 = vpack.c.bf16 %v27_v1, %v27_v1  ;;  %v164_v4 = vld [vmem:[%s245_s3] sm:$0xff]  ;;  %128 = vmatpush.bf16.msra.mxu2 %v167_v11 }
   0x4   :  { %v168_v5 = vld [vmem:[%s243_s2] ss:$0 sm:$0xff] }
   0x5   :  { %144 = vmatmul.msk.bf16.vlgmr.msra.gmra.mxu0 %vm41_vm0, %v31_v2  ;;  %v166_v12 = vld [vmem:[%s247_s5] sm:$0xff] }
   0x6   :  { %91 = vmatpush.bf16.msra.mxu1 %v164_v4  ;;  %v169_v13 = vld [vmem:[%s244_s4] ss:$0 sm:$0xff] }
   0x7   :  { %129 = vmatpush.bf16.msra.mxu2 %v166_v12  ;;  %v170_v19 = vld [vmem:[%s246_s6] ss:$0 sm:$0xff] }
  0x82   :  { %v54_v6 = vpop.f32.mrf.mxu0 }
  0x83   :  { %v55_v7 = vadd.f32 %v168_v5, %v54_v6 }
  0x85   :  { %v58_v8 = vmax.f32 %v55_v7, 0.0 }
  0x87   :  { %v64_v9 = vpack.c.bf16 %v58_v8, %v58_v8 }
  0x89   :  { %153 = vmatmul.msk.bf16.vlgmr.msra.gmra.mxu1 %vm80_vm1, %v64_v9 }
  0x8a   :  { %v56_v10 = vpop.f32.mrf.mxu0 }
 0x106   :  { %v93_v14 = vpop.f32.mrf.mxu1 }
 0x107   :  { %v94_v15 = vadd.f32 %v169_v13, %v93_v14 }
 0x109   :  { %v97_v16 = vmax.f32 %v94_v15, 0.0 }
 0x10b   :  { %v103_v17 = vpack.c.bf16 %v97_v16, %v97_v16 }
 0x10d   :  { %162 = vmatmul.msk.bf16.vlgmr.msra.gmra.mxu2 %vm80_vm1, %v103_v17 }
 0x10e   :  { %v95_v18 = vpop.f32.mrf.mxu1 }
 0x190   :  { %v131_v20 = vpop.f32.mrf.mxu2 }
 0x191   :  { %v132_v21 = vadd.f32 %v170_v19, %v131_v20 }
 0x193   :  { %135 = vst [vmem:[%s248_s7] sm:$0xff] %v132_v21 }
 0x198   :  { %v133_v22 = vpop.f32.mrf.mxu2 }

</bundles_post_ra>
